<compile_context>
chip_gen: v6e
topology: v6e:2x2x1
jax: 0.10.0
libtpu: 0.0.40
codegen_flags: <defaults>
</compile_context>

<pallas_src>
import jax
import jax.numpy as jnp
from jax.experimental import pallas as pl
from jax.experimental.pallas import tpu as pltpu

LANE = 128
SUBLANE = 8


def _round_up(n, m):
    return ((n + m - 1) // m) * m


# ----------------------------------------------------------------------------
# Kernel: fused z / c computation, single lane-dense output.
# ----------------------------------------------------------------------------
def ann_solver_kernel(x_ref, wz_ref, wc_ref, bias_ref, out_ref):
    wz = wz_ref[...]                         # (W, Kp)  PyTorch layout (out, in), zero-padded
    x = x_ref[...].astype(wz.dtype)          # (TM, Kp)
    # z[m, o] = sum_k x[m, k] * wz[o, k]   (contract axis 1 of both -> no transpose)
    z = jax.lax.dot_general(
        x, wz, dimension_numbers=(((1,), (1,)), ((), ())),
        preferred_element_type=jnp.float32)                       # (TM, W) f32; cols >=62 are 0

    wc = wc_ref[...]                         # (W, W); rows c_off..c_off+C hold wc, rest 0
    c = jax.lax.dot_general(
        z.astype(wc.dtype), wc, dimension_numbers=(((1,), (1,)), ((), ())),
        preferred_element_type=jnp.float32)                       # (TM, W); cols c_off..c_off+C

    # z occupies lanes [0, out_features), c lands in lanes [c_off, c_off+conti_num):
    # disjoint by construction, so a single add fuses both outputs into one slab.
    out_ref[...] = (z + c + bias_ref[...]).astype(out_ref.dtype)


# ----------------------------------------------------------------------------
# One-time weight preparation (solver reuses weights across many calls).
# ----------------------------------------------------------------------------
def prepare_params(wz, wc, bc, param_dtype=jnp.float32):
    """Zero-pad K to 128 lanes, pad/fuse the output feature axes into one 128-wide
    slab (z at cols [0,out_features), c at cols [c_off, c_off+conti_num))."""
    out_features, in_features = wz.shape
    conti_num = wc.shape[0]
    c_off = _round_up(out_features, SUBLANE)            # 62 -> 64
    W = _round_up(max(out_features, c_off + conti_num), LANE)   # fused output width (128)
    Kp = _round_up(in_features, LANE)                   # 32 -> 128 (full MXU contraction)

    wz_p = jnp.zeros((W, Kp), param_dtype).at[:out_features, :in_features].set(
        wz.astype(param_dtype))
    wc_p = jnp.zeros((W, W), param_dtype).at[
        c_off:c_off + conti_num, :out_features].set(wc.astype(param_dtype))
    bias_p = jnp.zeros((1, W), jnp.float32).at[0, c_off:c_off + conti_num].set(
        bc.astype(jnp.float32))
    return wz_p, wc_p, bias_p, c_off


# ----------------------------------------------------------------------------
# Generation-aware row-tile selection.
# ----------------------------------------------------------------------------
def _num_tensorcores():
    try:
        dev = jax.devices()[0]
        n = getattr(dev, "num_cores", None)
        if isinstance(n, int) and n > 0:
            return n
        if "v7" in str(getattr(dev, "device_kind", "")).lower():
            return 2
    except Exception:
        pass
    return 1


def _auto_block_m(m):
    m8 = _round_up(max(m, SUBLANE), SUBLANE)
    num_tc = _num_tensorcores()
    if num_tc > 1 and m8 >= 2 * SUBLANE:
        # v7x: keep >= num_tc row tiles so both TensorCores get work, cap at 512 rows.
        per_core = _round_up((m8 + num_tc - 1) // num_tc, SUBLANE)
        return max(SUBLANE, min(512, per_core))
    # v5e / v6e: the grid is a serial loop on one TC -> one big tile for small/medium M.
    return min(m8, 1024)


# ----------------------------------------------------------------------------
# pallas_call wrapper.
# ----------------------------------------------------------------------------
def _solver_pallas(x, wz_p, wc_p, bias_p, *, block_m, x_dtype=None):
    m, k = x.shape
    W, kp = wz_p.shape
    block_m = _round_up(max(block_m, SUBLANE), SUBLANE)   # (8,128) tiling rule
    m_pad = _round_up(max(m, SUBLANE), block_m)           # m_pad is a multiple of block_m

    xd = x.dtype if x_dtype is None else jnp.dtype(x_dtype)
    if (m_pad, kp) != (m, k) or xd != x.dtype:
        # one copy handles row pad, K->Kp lane pad and optional bf16 cast
        x = jnp.zeros((m_pad, kp), xd).at[:m, :k].set(x.astype(xd))

    grid = (m_pad // block_m,)
    isz = lambda a: jnp.dtype(a.dtype).itemsize
    cost = pl.CostEstimate(
        flops=2 * m_pad * (kp * W + W * W),
        transcendentals=0,
        bytes_accessed=int(x.size * isz(x) + wz_p.size * isz(wz_p)
                           + wc_p.size * isz(wc_p) + bias_p.size * 4
                           + m_pad * W * 4),
    )

    fused = pl.pallas_call(
        ann_solver_kernel,
        out_shape=jax.ShapeDtypeStruct((m_pad, W), jnp.float32),
        grid_spec=pltpu.PrefetchScalarGridSpec(
            num_scalar_prefetch=0,
            grid=grid,
            in_specs=[
                pl.BlockSpec((block_m, kp), lambda i: (i, 0)),  # x rows stream over grid
                pl.BlockSpec((W, kp), lambda i: (0, 0)),        # wz resident in VMEM
                pl.BlockSpec((W, W), lambda i: (0, 0)),         # wc resident in VMEM
                pl.BlockSpec((1, W), lambda i: (0, 0)),         # bias resident
            ],
            out_specs=pl.BlockSpec((block_m, W), lambda i: (i, 0)),
        ),
        compiler_params=pltpu.CompilerParams(
            dimension_semantics=("parallel",)),                 # megacore row split on v7x
        cost_estimate=cost,
    )(x, wz_p, wc_p, bias_p)
    return fused


# ----------------------------------------------------------------------------
# Public entry points.
# ----------------------------------------------------------------------------
def ann_solver_batched_fused(x, wz, wc, bc, *, block_m=None,
                             param_dtype=jnp.float32, x_dtype=None):
    """Returns the raw fused (m_pad, 128) output plus (out_features, c_off, conti_num)
    so downstream code can consume it without wrapper slice copies."""
    out_features = wz.shape[0]
    conti_num = wc.shape[0]
    wz_p, wc_p, bias_p, c_off = prepare_params(wz, wc, bc, param_dtype)
    if block_m is None:
        block_m = _auto_block_m(x.shape[0])
    fused = _solver_pallas(x, wz_p, wc_p, bias_p, block_m=block_m, x_dtype=x_dtype)
    return fused, (out_features, c_off, conti_num)


def ann_solver_batched(x, wz, wc, bc, *, block_m=None,
                       param_dtype=jnp.float32, x_dtype=None):
    """Throughput path: many X rows per pallas_call, weights VMEM-resident,
    single fused lane-dense output sliced back into (out_z, out_c)."""
    m = x.shape[0]
    fused, (out_features, c_off, conti_num) = ann_solver_batched_fused(
        x, wz, wc, bc, block_m=block_m, param_dtype=param_dtype, x_dtype=x_dtype)
    out_z = fused[:m, :out_features]
    out_c = fused[:m, c_off:c_off + conti_num]
    return out_z, out_c


def ann_solver_forward(x, wz, wc, bc, *, use_pallas=False, param_dtype=jnp.float32):
    """Exact PyTorch module semantics:
         out_z = z_layer(X); out_c = c_layer(out_z.view(1, 1, 62)).
    At batch=1 a Pallas call is pure dispatch + weight-DMA overhead, so the default
    is plain jnp dots (XLA fuses these); set use_pallas=True to force the kernel."""
    out_features = wz.shape[0]
    conti_num = wc.shape[0]
    assert out_features == 62, "module hard-codes view((1, 1, 62))"
    assert x.shape[0] == 1, "view((1, 1, 62)) implies a single input row"
    if not use_pallas:
        out_z = x @ wz.T
        out_c = out_z.reshape(1, 1, out_features) @ wc.T + bc
        return out_z, out_c
    out_z, out_c = ann_solver_batched(x, wz, wc, bc, block_m=SUBLANE,
                                      param_dtype=param_dtype)
    return out_z, out_c.reshape(1, 1, conti_num)


# ----------------------------------------------------------------------------
# Self-test.
# ----------------------------------------------------------------------------
if __name__ == "__main__":
    in_features, out_features, conti_num = 32, 62, 8

    key = jax.random.PRNGKey(0)
    kx, kwz, kwc, kbc, kxb = jax.random.split(key, 5)

    x = jax.random.normal(kx, (1, in_features), dtype=jnp.float32)

    # torch.nn.Linear-style init: U(-1/sqrt(fan_in), 1/sqrt(fan_in))
    bnd_z = 1.0 / jnp.sqrt(jnp.float32(in_features))
    bnd_c = 1.0 / jnp.sqrt(jnp.float32(out_features))
    wz = jax.random.uniform(kwz, (out_features, in_features), jnp.float32,
                            minval=-bnd_z, maxval=bnd_z)
    wc = jax.random.uniform(kwc, (conti_num, out_features), jnp.float32,
                            minval=-bnd_c, maxval=bnd_c)
    bc = jax.random.uniform(kbc, (conti_num,), jnp.float32,
                            minval=-bnd_c, maxval=bnd_c)

    # Reference (plain JAX, matches the PyTorch module)
    ref_z = x @ wz.T
    ref_c = ref_z.reshape(1, 1, out_features) @ wc.T + bc

    # 1) module-semantic forward (batch=1): default path bypasses Pallas (perf review).
    out_z, out_c = ann_solver_forward(x, wz, wc, bc)
    jax.block_until_ready((out_z, out_c))
    assert out_z.shape == (1, out_features) and out_c.shape == (1, 1, conti_num)
    assert jnp.allclose(out_z, ref_z, atol=1e-5)
    assert jnp.allclose(out_c, ref_c, atol=1e-5)

    # 2) same forward forced through the Pallas kernel (single fused-output tile).
    out_zp, out_cp = ann_solver_forward(x, wz, wc, bc, use_pallas=True)
    jax.block_until_ready((out_zp, out_cp))
    assert out_zp.shape == (1, out_features) and out_cp.shape == (1, 1, conti_num)
    assert jnp.allclose(out_zp, ref_z, atol=1e-5)
    assert jnp.allclose(out_cp, ref_c, atol=1e-5)

    # 3) batched throughput path: 256 rows, generation-aware tile size
    #    (one tile on 1-TC v5e/v6e, two 128-row tiles on 2-TC v7x), fused output.
    xb = jax.random.normal(kxb, (256, in_features), dtype=jnp.float32)
    zb, cb = ann_solver_batched(xb, wz, wc, bc)
    jax.block_until_ready((zb, cb))
    ref_zb = xb @ wz.T
    ref_cb = ref_zb @ wc.T + bc
    assert zb.shape == (256, out_features) and cb.shape == (256, conti_num)
    assert jnp.allclose(zb, ref_zb, atol=1e-4)
    assert jnp.allclose(cb, ref_cb, atol=1e-4)

    # 4) bf16 weights + bf16 activations (halves HBM traffic on v5e/v6e/v7x,
    #    f32 accumulation on the MXU).
    zb16, cb16 = ann_solver_batched(xb, wz, wc, bc,
                                    param_dtype=jnp.bfloat16, x_dtype=jnp.bfloat16)
    jax.block_until_ready((zb16, cb16))
    assert jnp.allclose(zb16, ref_zb, rtol=3e-2, atol=3e-2)
    assert jnp.allclose(cb16, ref_cb, rtol=3e-2, atol=3e-2)

    print("KERNEL_OK")
</pallas_src>

<mosaic_0001>
module attributes {stable_mosaic.version = 11 : i64} {
  func.func @ann_solver_kernel(%arg0: i32, %arg1: memref<8x128xf32, #tpu.memory_space<vmem>>, %arg2: memref<128x128xf32, #tpu.memory_space<vmem>>, %arg3: memref<128x128xf32, #tpu.memory_space<vmem>>, %arg4: memref<1x128xf32, #tpu.memory_space<vmem>>, %arg5: memref<8x128xf32, #tpu.memory_space<vmem>>) attributes {dimension_semantics = [#tpu.dimension_semantics<parallel>], iteration_bounds = array<i64: 1>, scalar_prefetch = 0 : i64, scratch_operands = 0 : i64, tpu.core_type = #tpu.core_type<tc>, window_params = [{transform_indices = @transform_0, window_bounds = array<i64: 8, 128>}, {pipeline_mode = #tpu.pipeline_mode<synchronous>, transform_indices = @transform_1, window_bounds = array<i64: 128, 128>}, {pipeline_mode = #tpu.pipeline_mode<synchronous>, transform_indices = @transform_2, window_bounds = array<i64: 128, 128>}, {pipeline_mode = #tpu.pipeline_mode<synchronous>, transform_indices = @transform_3, window_bounds = array<i64: 1, 128>}, {transform_indices = @transform_4, window_bounds = array<i64: 8, 128>}]} {
    %c0 = arith.constant 0 : index
    %c0_0 = arith.constant 0 : index
    %0 = vector.load %arg2[%c0, %c0_0] : memref<128x128xf32, #tpu.memory_space<vmem>>, vector<128x128xf32>
    %c0_1 = arith.constant 0 : index
    %c0_2 = arith.constant 0 : index
    %1 = vector.load %arg1[%c0_1, %c0_2] : memref<8x128xf32, #tpu.memory_space<vmem>>, vector<8x128xf32>
    %cst = arith.constant dense<0.000000e+00> : vector<8x128xf32>
    %2 = tpu.matmul %1, %0, %cst {dimension_numbers = #tpu.dot_dimension_numbers<[1], [1], [0], [0], [0, 0, 1, 0], [], []>} : vector<8x128xf32>, vector<128x128xf32>, vector<8x128xf32> -> vector<8x128xf32>
    %c0_3 = arith.constant 0 : index
    %c0_4 = arith.constant 0 : index
    %3 = vector.load %arg3[%c0_3, %c0_4] : memref<128x128xf32, #tpu.memory_space<vmem>>, vector<128x128xf32>
    %cst_5 = arith.constant dense<0.000000e+00> : vector<8x128xf32>
    %4 = tpu.matmul %2, %3, %cst_5 {dimension_numbers = #tpu.dot_dimension_numbers<[1], [1], [0], [0], [0, 0, 1, 0], [], []>} : vector<8x128xf32>, vector<128x128xf32>, vector<8x128xf32> -> vector<8x128xf32>
    %5 = arith.addf %2, %4 : vector<8x128xf32>
    %c0_6 = arith.constant 0 : index
    %c0_7 = arith.constant 0 : index
    %6 = vector.load %arg4[%c0_6, %c0_7] : memref<1x128xf32, #tpu.memory_space<vmem>>, vector<1x128xf32>
    %7 = vector.broadcast %6 : vector<1x128xf32> to vector<8x128xf32>
    %8 = arith.addf %5, %7 : vector<8x128xf32>
    %c0_8 = arith.constant 0 : index
    %c0_9 = arith.constant 0 : index
    %9 = vector.load %arg5[%c0_8, %c0_9] : memref<8x128xf32, #tpu.memory_space<vmem>>, vector<8x128xf32>
    tpu.vector_store %arg5[%c0_8, %c0_9], %8 {strides = array<i32>} : memref<8x128xf32, #tpu.memory_space<vmem>>, vector<8x128xf32>,
    return
  }
  func.func @transform_0(%arg0: i32) -> (i32, i32) {
    %c0_i32 = arith.constant 0 : i32
    %c0_i32_0 = arith.constant 0 : i32
    return %arg0, %c0_i32 : i32, i32
  }
  func.func @transform_1(%arg0: i32) -> (i32, i32) {
    %c0_i32 = arith.constant 0 : i32
    %c0_i32_0 = arith.constant 0 : i32
    %c0_i32_1 = arith.constant 0 : i32
    return %c0_i32, %c0_i32_0 : i32, i32
  }
  func.func @transform_2(%arg0: i32) -> (i32, i32) {
    %c0_i32 = arith.constant 0 : i32
    %c0_i32_0 = arith.constant 0 : i32
    %c0_i32_1 = arith.constant 0 : i32
    return %c0_i32, %c0_i32_0 : i32, i32
  }
  func.func @transform_3(%arg0: i32) -> (i32, i32) {
    %c0_i32 = arith.constant 0 : i32
    %c0_i32_0 = arith.constant 0 : i32
    %c0_i32_1 = arith.constant 0 : i32
    return %c0_i32, %c0_i32_0 : i32, i32
  }
  func.func @transform_4(%arg0: i32) -> (i32, i32) {
    %c0_i32 = arith.constant 0 : i32
    %c0_i32_0 = arith.constant 0 : i32
    return %arg0, %c0_i32 : i32, i32
  }
}

</mosaic_0001>

<bundles_post_ra>
// kernel: tpu_custom_call.1
= control target key start
LH: loop header
LB: loop body
LE: loop exit
PB: predicated region body
PF: predicated region fallthrough
CT: control target
= control target key end

     0   :  { %9 = vsyncpa [#allocation3], 0  ;;  %s537_s0 = inlined_call_operand.hbm [shape: f32[8,128], index: 0, kind: input, shape index: {}]   ;;  %s538_s1 = inlined_call_operand.hbm [shape: f32[128,128], index: 1, kind: input, shape index: {}]   ;;  %s539_s2 = inlined_call_operand.hbm [shape: f32[128,128], index: 2, kind: input, shape index: {}]   ;;  %s540_s3 = inlined_call_operand.vmem [shape: f32[1,128], index: 3, kind: input, shape index: {}]   ;;  %s541_s4 = inlined_call_operand.hbm [shape: f32[8,128], index: 4, kind: output, shape index: {}]  }
   0x1   :  { %10 = vsyncpa [#allocation6], 0 }
   0x2   :  { %11 = vsyncpa [#allocation4], 0  ;;  %s455_s15 = smov [#allocation5]  }
   0x3   :  { %s27_s16 = sshll.u32 %s455_s15, 4  ;;  %s28_s16 = int_to_ptr.vmem [resolvable:$true] %s27_s16 }
   0x4   :  { %s377_s17 = scalar_lea.vmem %s28_s16, 2048  ;;  %p382_p1 = scmp.lt.s32.totalorder %s28_s16, %s28_s16 }
   0x5   :  { %p378_p0 = scmp.ne.s32.totalorder %s28_s16, %s377_s17  ;;  %p383_p2 = scmp.lt.s32.totalorder %s377_s17, %s377_s17 }
   0x7   :  { %p384_p3 = por %p383_p2, %p382_p1 }
   0x9   :  { %p385_p4 = pnand %p384_p3, %p378_p0 }
   0xb   :  { %388 = shalt.err (!%p385_p4)
}
   0xc   :  { %s456_s18 = smov 128   ;;  %s457_s19 = smov 8  }
   0xd   :  { %33 = dma.hbm_to_vmem [thread:$0]  %s538_s1, 2048, %s28_s16, [#allocation6], %s456_s18, %s456_s18, %s457_s19  }
   0xe   :  { %s458_s22 = smov [#allocation2]   ;;  %s459_s24 = smov [#allocation7]  }
   0xf   :  { %s18_s23 = sshll.u32 %s458_s22, 4  ;;  %s39_s25 = sshll.u32 %s459_s24, 4  ;;  %s19_s23 = int_to_ptr.vmem [resolvable:$true] %s18_s23  ;;  %s40_s25 = int_to_ptr.vmem [resolvable:$true] %s39_s25 }
  0x10   :  { %s397_s26 = scalar_lea.vmem %s19_s23, 128  ;;  %p402_p6 = scmp.lt.s32.totalorder %s19_s23, %s19_s23 }
  0x11   :  { %p398_p5 = scmp.ne.s32.totalorder %s19_s23, %s397_s26  ;;  %p403_p7 = scmp.lt.s32.totalorder %s397_s26, %s397_s26 }
  0x13   :  { %p404_p8 = por %p403_p7, %p402_p6 }
  0x15   :  { %p405_p9 = pnand %p404_p8, %p398_p5 }
  0x17   :  { %408 = shalt.err (!%p405_p9)
}
  0x18   :  { %21 = dma.hbm_to_vmem [thread:$0]  %s537_s0, 128, %s19_s23, [#allocation3]  }
  0x19   :  { %s417_s29 = scalar_lea.vmem %s40_s25, 2048  ;;  %p422_p11 = scmp.lt.s32.totalorder %s40_s25, %s40_s25 }
  0x1a   :  { %p418_p10 = scmp.ne.s32.totalorder %s40_s25, %s417_s29  ;;  %p423_p12 = scmp.lt.s32.totalorder %s417_s29, %s417_s29 }
  0x1c   :  { %p424_p13 = por %p423_p12, %p422_p11 }
  0x1e   :  { %p425_p0 = pnand %p424_p13, %p418_p10 }
  0x20   :  { %428 = shalt.err (!%p425_p0)
}
  0x21   :  { %45 = dma.hbm_to_vmem [thread:$0]  %s539_s2, 2048, %s40_s25, [#allocation6], %s456_s18, %s456_s18, %s457_s19  }
  0x22   :  { %449 = dma.done.wait [#allocation3], 128  }
  0x23   :  { %450 = vsyncadd [#allocation3], 4294967168 }
  0x24   :  { %451 = dma.done.wait [#allocation6], 4096  }
  0x25   :  { %452 = vsyncadd [#allocation6], 4294963200  ;;  %v460_v0 = vmov 0.0   ;;  %vm461_vm0 = vmmov 0   ;;  %v72_v1 = vld [vmem:[#allocation5 + $0x78] sm:$0xff]  ;;  %v71_v2 = vld [vmem:[#allocation5 + $0x70] sm:$0xff] }
  0x26   :  { %291 = vmatprep.subr.mxu0 %v460_v0  ;;  %323 = vmatprep.mubr.msk.f32.mxu0 %vm461_vm0, %v460_v0  ;;  %v159_v3 = vld [vmem:[#allocation7 + $0x78] sm:$0xff]  ;;  %v70_v4 = vld [vmem:[#allocation5 + $0x68] sm:$0xff]  ;;  %v158_v5 = vld [vmem:[#allocation7 + $0x70] sm:$0xff]  ;;  %s462_s5 = smov [#allocation8]  }
  0x27   :  { %326 = vmatprep.subr.mxu1 %v460_v0  ;;  %358 = vmatprep.mubr.msk.f32.mxu1 %vm461_vm0, %v460_v0  ;;  %v69_v6 = vld [vmem:[#allocation5 + $0x60] sm:$0xff]  ;;  %v157_v7 = vld [vmem:[#allocation7 + $0x68] sm:$0xff]  ;;  %v68_v8 = vld [vmem:[#allocation5 + $0x58] sm:$0xff]  ;;  %s246_s6 = sshll.u32 %s462_s5, 4  ;;  %s247_s6 = int_to_ptr.vmem [resolvable:$true] %s246_s6 }
  0x28   :  { %292 = vmatpush3.xpose.msra.mxu0 %v72_v1  ;;  %327 = vmatpush3.xpose.msra.mxu1 %v159_v3  ;;  %v156_v9 = vld [vmem:[#allocation7 + $0x60] sm:$0xff]  ;;  %v67_v10 = vld [vmem:[#allocation5 + $0x50] sm:$0xff]  ;;  %v155_v11 = vld [vmem:[#allocation7 + $0x58] sm:$0xff]  ;;  %s429_s7 = scalar_lea.vmem %s247_s6, 128  ;;  %p434_p2 = scmp.lt.s32.totalorder %s247_s6, %s247_s6 }
  0x29   :  { %293 = vmatprep.subr.mxu0 %v460_v0  ;;  %328 = vmatprep.subr.mxu1 %v460_v0  ;;  %v66_v12 = vld [vmem:[#allocation5 + $0x48] sm:$0xff]  ;;  %v154_v13 = vld [vmem:[#allocation7 + $0x50] sm:$0xff]  ;;  %v65_v14 = vld [vmem:[#allocation5 + $0x40] sm:$0xff]  ;;  %p430_p1 = scmp.ne.s32.totalorder %s247_s6, %s429_s7  ;;  %p435_p3 = scmp.lt.s32.totalorder %s429_s7, %s429_s7 }
  0x2a   :  { %v153_v15 = vld [vmem:[#allocation7 + $0x48] sm:$0xff]  ;;  %v64_v16 = vld [vmem:[#allocation5 + $0x38] sm:$0xff]  ;;  %v152_v17 = vld [vmem:[#allocation7 + $0x40] sm:$0xff] }
  0x2b   :  { %v63_v18 = vld [vmem:[#allocation5 + $0x30] sm:$0xff]  ;;  %v151_v19 = vld [vmem:[#allocation7 + $0x38] sm:$0xff]  ;;  %v62_v20 = vld [vmem:[#allocation5 + $0x28] sm:$0xff]  ;;  %p436_p4 = por %p435_p3, %p434_p2 }
  0x2c   :  { %294 = vmatpush3.xpose.msra.mxu0 %v71_v2  ;;  %329 = vmatpush3.xpose.msra.mxu1 %v158_v5  ;;  %v150_v21 = vld [vmem:[#allocation7 + $0x30] sm:$0xff]  ;;  %v61_v22 = vld [vmem:[#allocation5 + $0x20] sm:$0xff]  ;;  %v149_v23 = vld [vmem:[#allocation7 + $0x28] sm:$0xff] }
  0x2d   :  { %295 = vmatprep.subr.mxu0 %v460_v0  ;;  %330 = vmatprep.subr.mxu1 %v460_v0  ;;  %v60_v24 = vld [vmem:[#allocation5 + $0x18] sm:$0xff]  ;;  %v148_v25 = vld [vmem:[#allocation7 + $0x20] sm:$0xff]  ;;  %v59_v26 = vld [vmem:[#allocation5 + $0x10] sm:$0xff]  ;;  %p437_p5 = pnand %p436_p4, %p430_p1 }
  0x2e   :  { %v147_v27 = vld [vmem:[#allocation7 + $0x18] sm:$0xff]  ;;  %v58_v28 = vld [vmem:[#allocation5 + $0x8] sm:$0xff]  ;;  %v146_v29 = vld [vmem:[#allocation7 + $0x10] sm:$0xff] }
  0x2f   :  { %v57_v30 = vld [vmem:[#allocation5] sm:$0xff]  ;;  %v145_v31 = vld [vmem:[#allocation7 + $0x8] sm:$0xff]  ;;  %v73_v32 = vld [vmem:[#allocation2] sm:$0xff] }
  0x30   :  { %296 = vmatpush3.xpose.msra.mxu0 %v70_v4  ;;  %331 = vmatpush3.xpose.msra.mxu1 %v157_v7  ;;  %v144_v33 = vld [vmem:[#allocation7] sm:$0xff]  ;;  %v256_v37 = vld [vmem:[%s540_s3] ss:$0 sm:$0xff] }
  0x31   :  { %297 = vmatprep.subr.mxu0 %v460_v0  ;;  %332 = vmatprep.subr.mxu1 %v460_v0 }
  0x34   :  { %298 = vmatpush3.xpose.msra.mxu0 %v69_v6  ;;  %333 = vmatpush3.xpose.msra.mxu1 %v156_v9 }
  0x35   :  { %299 = vmatprep.subr.mxu0 %v460_v0  ;;  %334 = vmatprep.subr.mxu1 %v460_v0 }
  0x38   :  { %300 = vmatpush3.xpose.msra.mxu0 %v68_v8  ;;  %335 = vmatpush3.xpose.msra.mxu1 %v155_v11 }
  0x39   :  { %301 = vmatprep.subr.mxu0 %v460_v0  ;;  %336 = vmatprep.subr.mxu1 %v460_v0 }
  0x3c   :  { %302 = vmatpush3.xpose.msra.mxu0 %v67_v10  ;;  %337 = vmatpush3.xpose.msra.mxu1 %v154_v13 }
  0x3d   :  { %303 = vmatprep.subr.mxu0 %v460_v0  ;;  %338 = vmatprep.subr.mxu1 %v460_v0 }
  0x40   :  { %304 = vmatpush3.xpose.msra.mxu0 %v66_v12  ;;  %339 = vmatpush3.xpose.msra.mxu1 %v153_v15 }
  0x41   :  { %305 = vmatprep.subr.mxu0 %v460_v0  ;;  %340 = vmatprep.subr.mxu1 %v460_v0 }
  0x44   :  { %306 = vmatpush3.xpose.msra.mxu0 %v65_v14  ;;  %341 = vmatpush3.xpose.msra.mxu1 %v152_v17 }
  0x45   :  { %307 = vmatprep.subr.mxu0 %v460_v0  ;;  %342 = vmatprep.subr.mxu1 %v460_v0 }
  0x48   :  { %308 = vmatpush3.xpose.msra.mxu0 %v64_v16  ;;  %343 = vmatpush3.xpose.msra.mxu1 %v151_v19 }
  0x49   :  { %309 = vmatprep.subr.mxu0 %v460_v0  ;;  %344 = vmatprep.subr.mxu1 %v460_v0 }
  0x4c   :  { %310 = vmatpush3.xpose.msra.mxu0 %v63_v18  ;;  %345 = vmatpush3.xpose.msra.mxu1 %v150_v21 }
  0x4d   :  { %311 = vmatprep.subr.mxu0 %v460_v0  ;;  %346 = vmatprep.subr.mxu1 %v460_v0 }
  0x50   :  { %312 = vmatpush3.xpose.msra.mxu0 %v62_v20  ;;  %347 = vmatpush3.xpose.msra.mxu1 %v149_v23 }
  0x51   :  { %313 = vmatprep.subr.mxu0 %v460_v0  ;;  %348 = vmatprep.subr.mxu1 %v460_v0 }
  0x54   :  { %314 = vmatpush3.xpose.msra.mxu0 %v61_v22  ;;  %349 = vmatpush3.xpose.msra.mxu1 %v148_v25 }
  0x55   :  { %315 = vmatprep.subr.mxu0 %v460_v0  ;;  %350 = vmatprep.subr.mxu1 %v460_v0 }
  0x58   :  { %316 = vmatpush3.xpose.msra.mxu0 %v60_v24  ;;  %351 = vmatpush3.xpose.msra.mxu1 %v147_v27 }
  0x59   :  { %317 = vmatprep.subr.mxu0 %v460_v0  ;;  %352 = vmatprep.subr.mxu1 %v460_v0 }
  0x5c   :  { %318 = vmatpush3.xpose.msra.mxu0 %v59_v26  ;;  %353 = vmatpush3.xpose.msra.mxu1 %v146_v29 }
  0x5d   :  { %319 = vmatprep.subr.mxu0 %v460_v0  ;;  %354 = vmatprep.subr.mxu1 %v460_v0 }
  0x60   :  { %320 = vmatpush3.xpose.msra.mxu0 %v58_v28  ;;  %355 = vmatpush3.xpose.msra.mxu1 %v145_v31 }
  0x61   :  { %321 = vmatprep.subr.mxu0 %v460_v0  ;;  %356 = vmatprep.subr.mxu1 %v460_v0 }
  0x64   :  { %322 = vmatpush3.xpose.msra.mxu0 %v57_v30  ;;  %357 = vmatpush3.xpose.msra.mxu1 %v144_v33 }
  0x67   :  { %324 = vmatmul.mubr.f32.vlgmr.msra.gmra.mxu0 %v73_v32 }
 0x127   :  { %v140_v34 = vpop.f32.mrf.mxu0 }
 0x128   :  { %359 = vmatmul.mubr.f32.vlgmr.msra.gmra.mxu1 %v140_v34 }
 0x129   :  { %v325_v35 = vpop.f32.mrf.mxu0 }
 0x1e8   :  { %v226_v36 = vpop.f32.mrf.mxu1 }
 0x1e9   :  { %v230_v38 = vadd.f32 %v226_v36, %v140_v34 }
 0x1ea   :  { %v360_v39 = vpop.f32.mrf.mxu1 }
 0x1eb   :  { %v238_v40 = vadd.f32 %v256_v37, %v230_v38 }
 0x1ed   :  { %239 = vst [vmem:[#allocation8] sm:$0xff] %v238_v40 }
 0x1ee   :  { %440 = shalt.err (!%p437_p5)
}
 0x1ef   :  { %249 = dma.vmem_to_hbm [thread:$0]  %s247_s6, 128, %s541_s4, [#allocation4]  }
 0x1f0   :  { %453 = dma.done.wait [#allocation4], 128  }
 0x1f1   :  { %454 = vsyncadd [#allocation4], 4294967168 }
 0x1f2   :  { %253 = vsyncpa [#allocation3], 1 }
 0x1f3   :  { %254 = vsyncpa [#allocation6], 1 }
 0x1f4   :  { %255 = vsyncpa [#allocation4], 1 }

</bundles_post_ra>
